<compile_context>
chip_gen: v7x
topology: tpu7x:2x2x1
jax: 0.10.0
libtpu: 0.0.40
codegen_flags: <defaults>
</compile_context>

<pallas_src>
import jax
import jax.numpy as jnp
from jax.experimental import pallas as pl
from jax.experimental.pallas import tpu as pltpu


def _round_up(n, m):
    return ((n + m - 1) // m) * m


def value_net_kernel(x_ref, w1_ref, b1_ref, w2_ref, b2_ref, out_ref):
    # fc1: (TB, S)bf16 @ (S, H)bf16 -> f32 accumulate on the MXU.
    h = jnp.dot(x_ref[...], w1_ref[...], preferred_element_type=jnp.float32)
    # Bias + ReLU in f32 on the VPU (keep elementwise math out of bf16 for v5e).
    h = jnp.maximum(h + b1_ref[...], 0.0)                       # (TB, H) f32
    # fc2: contract H between w2 (1, H) and h (TB, H) -> (1, TB).  The result
    # lands along the lane axis, so the writeback is a lane-dense store.
    v = jax.lax.dot_general(
        w2_ref[...], h,
        dimension_numbers=(((1,), (1,)), ((), ())),
        preferred_element_type=jnp.float32)                     # (1, TB)
    out_ref[...] = (v + b2_ref[0, 0])[None].astype(out_ref.dtype)  # (1, 1, TB)


def value_net_forward(x, w1, b1, w2, b2, *, block_b=512):
    """x: (B, state_dim) float32. Returns (B, 1) float32."""
    B, S = x.shape
    H = w1.shape[1]
    assert block_b % 128 == 0
    # Tile size: multiple of 128 -> sublane-aligned x tile and a lane-dense
    # output slab.  ~512 rows is the measured sweet spot at large B; clamp for
    # small batches so we don't over-pad.
    TB = min(block_b, _round_up(B, 128))
    num_tiles = pl.cdiv(B, TB)
    B_pad = num_tiles * TB

    # bf16 inputs for the fc1 matmul; accumulation stays f32 inside the kernel.
    x_p = x.astype(jnp.bfloat16)
    if B_pad != B:
        x_p = jnp.pad(x_p, ((0, B_pad - B), (0, 0)))
    w1_bf16 = w1.astype(jnp.bfloat16)
    w2_row = w2.reshape(1, H).astype(jnp.float32)

    # VMEM per step (double-buffered x tile + f32 intermediates + resident
    # weights) is tiny here.  TODO(synk): if state_dim/hidden_dim grow into the
    # thousands, re-derive TB against v7x's 64 MiB VMEM (vs 128 MiB on
    # v5e/v6e) or raise vmem_limit_bytes in CompilerParams.
    out_slab = pl.pallas_call(
        value_net_kernel,
        out_shape=jax.ShapeDtypeStruct((num_tiles, 1, TB), jnp.float32),
        grid=(num_tiles,),
        in_specs=[
            pl.BlockSpec((TB, S), lambda i: (i, 0)),            # x: batch-tiled
            pl.BlockSpec((S, H), lambda i: (0, 0)),             # w1: resident
            pl.BlockSpec((1, H), lambda i: (0, 0)),             # b1: resident
            pl.BlockSpec((1, H), lambda i: (0, 0)),             # w2 row: resident
            pl.BlockSpec(memory_space=pltpu.MemorySpace.SMEM),  # b2 scalar
        ],
        out_specs=pl.BlockSpec((1, 1, TB), lambda i: (i, 0, 0)),
        compiler_params=pltpu.CompilerParams(
            dimension_semantics=("parallel",)),  # megacore split on v7x
    )(x_p, w1_bf16, b1, w2_row, b2)

    # Lane-dense slab back to the module's (B, 1) output (layout plumbing only).
    return out_slab.reshape(B_pad, 1)[:B]


def init_value_net_params(key, state_dim, hidden_dim):
    """Mimics torch.nn.Linear default init: U[-1/sqrt(fan_in), 1/sqrt(fan_in)]."""
    k1, k2, k3, k4 = jax.random.split(key, 4)
    bound1 = 1.0 / jnp.sqrt(state_dim)
    bound2 = 1.0 / jnp.sqrt(hidden_dim)
    # stored pre-transposed: (in, out)
    w1 = jax.random.uniform(k1, (state_dim, hidden_dim), jnp.float32, -bound1, bound1)
    b1 = jax.random.uniform(k2, (1, hidden_dim), jnp.float32, -bound1, bound1)
    w2 = jax.random.uniform(k3, (hidden_dim, 1), jnp.float32, -bound2, bound2)
    b2 = jax.random.uniform(k4, (1, 1), jnp.float32, -bound2, bound2)
    return w1, b1, w2, b2


def value_net_ref(x, w1, b1, w2, b2):
    h = jnp.maximum(x @ w1 + b1, 0.0)
    return h @ w2 + b2


if __name__ == "__main__":
    batch, state_dim, hidden_dim = 8, 16, 32

    key = jax.random.PRNGKey(0)
    kx, kp = jax.random.split(key)
    x = jax.random.normal(kx, (batch, state_dim), jnp.float32)
    w1, b1, w2, b2 = init_value_net_params(kp, state_dim, hidden_dim)

    out = value_net_forward(x, w1, b1, w2, b2)
    out = jax.block_until_ready(out)

    ref = value_net_ref(x, w1, b1, w2, b2)
    assert out.shape == (batch, 1), out.shape
    # fc1 inputs are bf16 inside the kernel (f32 accumulate), so compare
    # against the pure-f32 reference with a bf16-sized tolerance.
    assert jnp.allclose(out, ref, atol=1e-2, rtol=1e-2), (out, ref)

    print("KERNEL_OK")
</pallas_src>

<mosaic_0001>
module attributes {stable_mosaic.version = 11 : i64} {
  func.func @value_net_kernel(%arg0: i32, %arg1: memref<128x16xbf16, #tpu.memory_space<vmem>>, %arg2: memref<16x32xbf16, #tpu.memory_space<vmem>>, %arg3: memref<1x32xf32, #tpu.memory_space<vmem>>, %arg4: memref<1x32xf32, #tpu.memory_space<vmem>>, %arg5: memref<1x1xf32, #tpu.memory_space<smem>>, %arg6: memref<1x1x128xf32, #tpu.memory_space<vmem>>) attributes {dimension_semantics = [#tpu.dimension_semantics<parallel>], iteration_bounds = array<i64: 1>, scalar_prefetch = 0 : i64, scratch_operands = 0 : i64, tpu.core_type = #tpu.core_type<tc>, window_params = [{transform_indices = @transform_0, window_bounds = array<i64: 128, 16>}, {pipeline_mode = #tpu.pipeline_mode<synchronous>, transform_indices = @transform_1, window_bounds = array<i64: 16, 32>}, {pipeline_mode = #tpu.pipeline_mode<synchronous>, transform_indices = @transform_2, window_bounds = array<i64: 1, 32>}, {pipeline_mode = #tpu.pipeline_mode<synchronous>, transform_indices = @transform_3, window_bounds = array<i64: 1, 32>}, {transform_indices = @transform_4, window_bounds = array<i64: 1, 1>}, {transform_indices = @transform_5, window_bounds = array<i64: 1, 1, 128>}]} {
    %c0 = arith.constant 0 : index
    %c0_0 = arith.constant 0 : index
    %0 = vector.load %arg1[%c0, %c0_0] : memref<128x16xbf16, #tpu.memory_space<vmem>>, vector<128x16xbf16>
    %c0_1 = arith.constant 0 : index
    %c0_2 = arith.constant 0 : index
    %1 = vector.load %arg2[%c0_1, %c0_2] : memref<16x32xbf16, #tpu.memory_space<vmem>>, vector<16x32xbf16>
    %cst = arith.constant dense<0.000000e+00> : vector<128x32xf32>
    %2 = tpu.matmul %0, %1, %cst {dimension_numbers = #tpu.dot_dimension_numbers<[1], [0], [0], [1], [0, 0, 1, 1], [], []>} : vector<128x16xbf16>, vector<16x32xbf16>, vector<128x32xf32> -> vector<128x32xf32>
    %c0_3 = arith.constant 0 : index
    %c0_4 = arith.constant 0 : index
    %3 = vector.load %arg3[%c0_3, %c0_4] : memref<1x32xf32, #tpu.memory_space<vmem>>, vector<1x32xf32>
    %4 = vector.broadcast %3 : vector<1x32xf32> to vector<128x32xf32>
    %5 = arith.addf %2, %4 : vector<128x32xf32>
    %cst_5 = arith.constant 0.000000e+00 : f32
    %6 = vector.broadcast %cst_5 : f32 to vector<128x32xf32>
    %7 = arith.maximumf %5, %6 : vector<128x32xf32>
    %c0_6 = arith.constant 0 : index
    %c0_7 = arith.constant 0 : index
    %8 = vector.load %arg4[%c0_6, %c0_7] : memref<1x32xf32, #tpu.memory_space<vmem>>, vector<1x32xf32>
    %cst_8 = arith.constant dense<0.000000e+00> : vector<1x128xf32>
    %9 = tpu.matmul %8, %7, %cst_8 {dimension_numbers = #tpu.dot_dimension_numbers<[1], [1], [0], [0], [0, 0, 1, 0], [], []>} : vector<1x32xf32>, vector<128x32xf32>, vector<1x128xf32> -> vector<1x128xf32>
    %c0_9 = arith.constant 0 : index
    %c0_10 = arith.constant 0 : index
    %10 = memref.load %arg5[%c0_9, %c0_10] : memref<1x1xf32, #tpu.memory_space<smem>>
    %11 = vector.broadcast %10 : f32 to vector<1x128xf32>
    %12 = arith.addf %9, %11 : vector<1x128xf32>
    %13 = vector.shape_cast %12 : vector<1x128xf32> to vector<1x1x128xf32>
    %c0_11 = arith.constant 0 : index
    %c0_12 = arith.constant 0 : index
    %c0_13 = arith.constant 0 : index
    %14 = vector.load %arg6[%c0_11, %c0_12, %c0_13] : memref<1x1x128xf32, #tpu.memory_space<vmem>>, vector<1x1x128xf32>
    tpu.vector_store %arg6[%c0_11, %c0_12, %c0_13], %13 {strides = array<i32>} : memref<1x1x128xf32, #tpu.memory_space<vmem>>, vector<1x1x128xf32>,
    return
  }
  func.func @transform_0(%arg0: i32) -> (i32, i32) {
    %c0_i32 = arith.constant 0 : i32
    %c0_i32_0 = arith.constant 0 : i32
    return %arg0, %c0_i32 : i32, i32
  }
  func.func @transform_1(%arg0: i32) -> (i32, i32) {
    %c0_i32 = arith.constant 0 : i32
    %c0_i32_0 = arith.constant 0 : i32
    %c0_i32_1 = arith.constant 0 : i32
    return %c0_i32, %c0_i32_0 : i32, i32
  }
  func.func @transform_2(%arg0: i32) -> (i32, i32) {
    %c0_i32 = arith.constant 0 : i32
    %c0_i32_0 = arith.constant 0 : i32
    %c0_i32_1 = arith.constant 0 : i32
    return %c0_i32, %c0_i32_0 : i32, i32
  }
  func.func @transform_3(%arg0: i32) -> (i32, i32) {
    %c0_i32 = arith.constant 0 : i32
    %c0_i32_0 = arith.constant 0 : i32
    %c0_i32_1 = arith.constant 0 : i32
    return %c0_i32, %c0_i32_0 : i32, i32
  }
  func.func @transform_4(%arg0: i32) -> (i32, i32) {
    %c0_i32 = arith.constant 0 : i32
    %c0_i32_0 = arith.constant 0 : i32
    %c0_i32_1 = arith.constant 0 : i32
    return %c0_i32, %c0_i32_0 : i32, i32
  }
  func.func @transform_5(%arg0: i32) -> (i32, i32, i32) {
    %c0_i32 = arith.constant 0 : i32
    %c0_i32_0 = arith.constant 0 : i32
    %c0_i32_1 = arith.constant 0 : i32
    return %arg0, %c0_i32, %c0_i32_0 : i32, i32, i32
  }
}

</mosaic_0001>

<bundles_post_ra>
// kernel: tpu_custom_call.1
= control target key start
LH: loop header
LB: loop body
LE: loop exit
PB: predicated region body
PF: predicated region fallthrough
CT: control target
= control target key end

     0   :  { %vm94_vm0 = vcmask 130048   ;;  %s676_s0 = inlined_call_operand.vmem [shape: bf16[128,16], index: 0, kind: input, shape index: {}]   ;;  %s677_s1 = inlined_call_operand.vmem [shape: bf16[16,32], index: 1, kind: input, shape index: {}]   ;;  %s678_s2 = inlined_call_operand.vmem [shape: f32[1,32], index: 2, kind: input, shape index: {}]   ;;  %s679_s3 = inlined_call_operand.vmem [shape: f32[1,32], index: 3, kind: input, shape index: {}]   ;;  %s680_s4 = inlined_call_operand.<no memory space> [shape: f32[1,1], index: 4, kind: input, shape index: {}]   ;;  %s681_s5 = inlined_call_operand.hbm [shape: f32[1,1,128], index: 5, kind: output, shape index: {}]  }
   0x1   :  { %v522_v0 = vld [vmem:[%s677_s1] sm:$0xff]   ;;  %v524_v2 = vld [vmem:[%s676_s0 + $0x8] sm:$0xff]   ;;  %v525_v3 = vld [vmem:[%s676_s0 + $0x10] sm:$0xff]  }
   0x2   :  { %v523_v1 = vld [vmem:[%s676_s0] sm:$0xff]   ;;  %433 = vmatprep.subr.bf16.mxu0 %v522_v0 }
   0x3   :  { %434 = vmatpush3.bf16.msra.mxu0 %v522_v0  ;;  %435 = vmatprep.mubr.msk.bf16.mxu0 %vm94_vm0, %v523_v1 }
   0x6   :  { %436 = vmatmul.mubr.msk.bf16.vlgmr.msra.gmra.mrb[0].mxu0 %vm94_vm0, %v524_v2 }
   0x7   :  { %439 = vmatprep.mubr.msk.bf16.mxu0 %vm94_vm0, %v525_v3 }
   0x8   :  { %11 = vsyncpa [#allocation4], 0  ;;  %v526_v4 = vld [vmem:[%s676_s0 + $0x18] sm:$0xff]   ;;  %v527_v5 = vld [vmem:[%s676_s0 + $0x20] sm:$0xff]   ;;  %v555_v9 = vmov 0.0|0.0   ;;  %vm556_vm1 = vmmov 0  }
   0x9   :  { %v528_v6 = vld [vmem:[%s676_s0 + $0x28] sm:$0xff]   ;;  %v529_v7 = vld [vmem:[%s676_s0 + $0x30] sm:$0xff]   ;;  %v530_v8 = vld [vmem:[%s676_s0 + $0x38] sm:$0xff]   ;;  %486 = vmatprep.subr.bf16.mxu1 %v555_v9  ;;  %v557_v10 = vmov 0.0   ;;  %vm235_vm2 = vcmask 261120   ;;  %s558_s14 = smov [#allocation3]  }
   0xa   :  { %483 = vmatprep.mubr.msk.f32.mxu1 %vm556_vm1, %v557_v10  ;;  %v372_v11 = vld [vmem:[%s678_s2] ss:$0 sm:$0xff]  ;;  %vm630_vm3 = vmpackc.low %vm235_vm2, %vm235_vm2  ;;  %s364_s15 = sshll.u32 %s558_s14, 4  ;;  %s365_s15 = int_to_ptr.vmem [resolvable:$true] %s364_s15 }
   0xb   :  { %s531_s16 = scalar_lea.vmem %s365_s15, 16  ;;  %s535_s17 = scalar_lea.vmem %s365_s15, 32 }
   0xc   :  { %p532_p0 = scmp.ne.s32.totalorder %s365_s15, %s531_s16  ;;  %p536_p1 = scmp.lt.s32.totalorder %s365_s15, %s365_s15 }
   0xd   :  { %p537_p2 = scmp.lt.s32.totalorder %s535_s17, %s531_s16 }
   0xe   :  { %440 = vmatmul.mubr.msk.bf16.gmra.mrb[4].mxu0 %vm94_vm0, %v526_v4 }
   0xf   :  { %443 = vmatprep.mubr.msk.bf16.mxu0 %vm94_vm0, %v527_v5  ;;  %v232_v5 = vld [vmem:[%s679_s3] sm:$0x1]  ;;  %p538_p3 = por %p537_p2, %p536_p1 }
  0x11   :  { %p539_p4 = pnand %p538_p3, %p532_p0 }
  0x16   :  { %444 = vmatmul.mubr.msk.bf16.gmra.mrb[8].mxu0 %vm94_vm0, %v528_v6  ;;  %v234_v6 = vstv %s680_s4 }
  0x17   :  { %447 = vmatprep.mubr.msk.bf16.mxu0 %vm94_vm0, %v529_v7 }
  0x1e   :  { %448 = vmatmul.mubr.msk.bf16.gmra.mrb[12].mxu0 %vm94_vm0, %v530_v8 }
  0xd9   :  { %v437_v12 = vpop.f32.mrb[0].mxu0 }
  0xda   :  { %v162_v13 = vadd.f32 %v437_v12, %v372_v11  ;;  %v153_v14 = vpop.f32.mrb[1].mxu0 }
  0xdb   :  { %v154_v15 = vadd.f32 %v372_v11, %v153_v14  ;;  %v438_v16 = vpop.f32.mrb[2].mxu0 }
  0xdc   :  { %v165_v17 = vadd.f32 %v438_v16, %v372_v11  ;;  %v156_v18 = vpop.f32.mrb[3].mxu0  ;;  %v218_v20 = vmax.f32 %v162_v13, 0.0 }
  0xdd   :  { %v157_v19 = vadd.f32 %v372_v11, %v156_v18  ;;  %v216_v22 = vmax.f32 %v154_v15, 0.0 }
  0xde   :  { %v219_v21 = vmax.f32 %v165_v17, 0.0 }
  0xdf   :  { %v217_v23 = vmax.f32 %v157_v19, 0.0 }
  0xe0   :  { %v491_v24 = vpack.c.bf16 %v219_v21, %v218_v20 }
  0xe1   :  { %v487_v26 = vpack.c.bf16 %v217_v23, %v216_v22  ;;  %v441_v27 = vpop.f32.mrb[4].mxu0 }
  0xe2   :  { %v178_v28 = vadd.f32 %v441_v27, %v372_v11  ;;  %v169_v29 = vpop.f32.mrb[5].mxu0 }
  0xe3   :  { %489 = vmatpush3.bf16.xpose.msk.msra.mxu1 %vm630_vm3, %v487_v26  ;;  %v170_v30 = vadd.f32 %v372_v11, %v169_v29  ;;  %v442_v31 = vpop.f32.mrb[6].mxu0 }
  0xe4   :  { %v222_v32 = vmax.f32 %v178_v28, 0.0  ;;  %v181_v33 = vadd.f32 %v442_v31, %v372_v11  ;;  %v172_v34 = vpop.f32.mrb[7].mxu0  ;;  %490 = vmatprep.subr.bf16.mxu1 %v555_v9 }
  0xe5   :  { %v220_v35 = vmax.f32 %v170_v30, 0.0  ;;  %v173_v36 = vadd.f32 %v372_v11, %v172_v34 }
  0xe6   :  { %v223_v37 = vmax.f32 %v181_v33, 0.0 }
  0xe7   :  { %v221_v38 = vmax.f32 %v173_v36, 0.0 }
  0xe8   :  { %v499_v39 = vpack.c.bf16 %v223_v37, %v222_v32 }
  0xe9   :  { %v495_v40 = vpack.c.bf16 %v221_v38, %v220_v35  ;;  %v445_v41 = vpop.f32.mrb[8].mxu0 }
  0xea   :  { %v194_v42 = vadd.f32 %v445_v41, %v372_v11  ;;  %v185_v43 = vpop.f32.mrb[9].mxu0 }
  0xeb   :  { %493 = vmatpush3.bf16.xpose.msk.msra.mxu1 %vm630_vm3, %v491_v24  ;;  %v186_v44 = vadd.f32 %v372_v11, %v185_v43  ;;  %v446_v45 = vpop.f32.mrb[10].mxu0 }
  0xec   :  { %494 = vmatprep.subr.bf16.mxu1 %v555_v9  ;;  %v226_v46 = vmax.f32 %v194_v42, 0.0  ;;  %v197_v47 = vadd.f32 %v446_v45, %v372_v11  ;;  %v188_v48 = vpop.f32.mrb[11].mxu0 }
  0xed   :  { %v224_v49 = vmax.f32 %v186_v44, 0.0  ;;  %v189_v50 = vadd.f32 %v372_v11, %v188_v48 }
  0xee   :  { %v227_v51 = vmax.f32 %v197_v47, 0.0 }
  0xef   :  { %v225_v52 = vmax.f32 %v189_v50, 0.0 }
  0xf0   :  { %v507_v53 = vpack.c.bf16 %v227_v51, %v226_v46 }
  0xf1   :  { %v503_v54 = vpack.c.bf16 %v225_v52, %v224_v49  ;;  %v449_v55 = vpop.f32.mrb[12].mxu0 }
  0xf2   :  { %v210_v56 = vadd.f32 %v449_v55, %v372_v11  ;;  %v201_v57 = vpop.f32.mrb[13].mxu0 }
  0xf3   :  { %497 = vmatpush3.bf16.xpose.msk.msra.mxu1 %vm630_vm3, %v495_v40  ;;  %v202_v58 = vadd.f32 %v372_v11, %v201_v57  ;;  %v450_v59 = vpop.f32.mrb[14].mxu0 }
  0xf4   :  { %498 = vmatprep.subr.bf16.mxu1 %v555_v9  ;;  %v230_v60 = vmax.f32 %v210_v56, 0.0  ;;  %v213_v61 = vadd.f32 %v450_v59, %v372_v11  ;;  %v204_v62 = vpop.f32.mrb[15].mxu0 }
  0xf5   :  { %v228_v63 = vmax.f32 %v202_v58, 0.0  ;;  %v205_v0 = vadd.f32 %v372_v11, %v204_v62 }
  0xf6   :  { %v231_v1 = vmax.f32 %v213_v61, 0.0 }
  0xf7   :  { %v229_v2 = vmax.f32 %v205_v0, 0.0 }
  0xf8   :  { %v515_v3 = vpack.c.bf16 %v231_v1, %v230_v60 }
  0xf9   :  { %v511_v4 = vpack.c.bf16 %v229_v2, %v228_v63 }
  0xfb   :  { %501 = vmatpush3.bf16.xpose.msk.msra.mxu1 %vm630_vm3, %v499_v39 }
  0xfc   :  { %502 = vmatprep.subr.bf16.mxu1 %v555_v9 }
 0x103   :  { %505 = vmatpush3.bf16.xpose.msk.msra.mxu1 %vm630_vm3, %v503_v54 }
 0x104   :  { %506 = vmatprep.subr.bf16.mxu1 %v555_v9 }
 0x10b   :  { %509 = vmatpush3.bf16.xpose.msk.msra.mxu1 %vm630_vm3, %v507_v53 }
 0x10c   :  { %510 = vmatprep.subr.bf16.mxu1 %v555_v9 }
 0x113   :  { %513 = vmatpush3.bf16.xpose.msk.msra.mxu1 %vm630_vm3, %v511_v4 }
 0x114   :  { %514 = vmatprep.subr.bf16.mxu1 %v555_v9 }
 0x11b   :  { %517 = vmatpush3.bf16.xpose.msk.msra.mxu1 %vm630_vm3, %v515_v3 }
 0x122   :  { %484 = vmatmul.mubr.msk.f32.vlgmr.msra.gmra.mrb[0].mxu1 %vm235_vm2, %v232_v5 }
 0x1f5   :  { %v353_v7 = vpop.f32.mrb[0].mxu1 }
 0x1f6   :  { %v354_v8 = vadd.f32 %v353_v7, %v234_v6  ;;  %v485_v10 = vpop.f32.mrb[1].mxu1 }
 0x1f8   :  { %357 = vst [vmem:[#allocation3] sm:$0x1] %v354_v8 }
 0x1f9   :  { %542 = shalt.err (!%p539_p4)
}
 0x1fa   :  { %s543_s19 = scalar_lea.hbm %s681_s5, 16 }
 0x1fb   :  { %p544_p5 = scmp.ne.s32.totalorder %s681_s5, %s543_s19  ;;  %p547_p6 = scmp.lt.u32.totalorder %s543_s19, %s681_s5 }
 0x1fd   :  { %p549_p7 = pnand %p547_p6, %p544_p5 }
 0x1ff   :  { %552 = shalt.err (!%p549_p7)
}
 0x200   :  { %367 = dma.vmem_to_hbm [thread:$0]  %s365_s15, 16, %s681_s5, [#allocation4]  }
 0x201   :  { %553 = dma.done.wait [#allocation4], 16  }
 0x202   :  { %554 = vsyncadd [#allocation4], 4294967280 }
 0x203   :  { %371 = vsyncpa [#allocation4], 1 }

</bundles_post_ra>
